<compile_context>
chip_gen: v7x
topology: tpu7x:2x2x1
jax: 0.10.0
libtpu: 0.0.40
codegen_flags: <defaults>
</compile_context>

<pallas_src>
import jax
import jax.numpy as jnp
from jax import lax
from jax.experimental import pallas as pl
from jax.experimental.pallas import tpu as pltpu

EPS = 1e-5  # matches PyTorch default

_BLOCK_BYTES_TARGET = 2 * 1024 * 1024   # ~2 MiB per input block (f32)
_VMEM_LIMIT_BYTES = 32 * 1024 * 1024    # safe on v5e/v6e/v7x


def _pick_bb(B, T, C, itemsize):
    """Instances per block: ~_BLOCK_BYTES_TARGET, a divisor of B, >=2 grid steps."""
    per_inst = max(T * C * itemsize, 1)
    bb = max(1, min(B, _BLOCK_BYTES_TARGET // per_inst))
    if B >= 2:
        # keep at least 2 grid steps so v7x's two TensorCores both get work
        bb = max(1, min(bb, B // 2))
    while B % bb:
        bb -= 1
    return bb


# ----------------------------- kernels -------------------------------------

def revin_norm_kernel(x_ref, w_ref, b_ref, y_ref, mean_ref, std_ref):
    """Per-instance normalization over the time axis (mode='norm')."""
    x = x_ref[...].astype(jnp.float32)                  # (bb, T, C)
    t = x.shape[1]
    inv_t = jnp.float32(1.0 / t)

    # one-pass statistics (accumulated in f32); clamp var >= 0 against
    # catastrophic cancellation in E[x^2] - mean^2.
    s1 = jnp.sum(x, axis=1, keepdims=True)              # (bb, 1, C)
    s2 = jnp.sum(x * x, axis=1, keepdims=True)          # (bb, 1, C)
    mean = s1 * inv_t
    var = jnp.maximum(s2 * inv_t - mean * mean, 0.0)    # unbiased=False

    inv_std = lax.rsqrt(var + jnp.float32(EPS))         # EUP slot
    std = (var + jnp.float32(EPS)) * inv_std            # == sqrt(var + eps)

    w = w_ref[...].astype(jnp.float32)                  # (1, C)
    b = b_ref[...].astype(jnp.float32)                  # (1, C)
    scale = w * inv_std                                 # (bb, 1, C)
    offset = b - mean * scale                           # (bb, 1, C)

    # streamed body: one fused multiply-add per element
    y_ref[...] = (x * scale + offset).astype(y_ref.dtype)
    mean_ref[...] = mean.astype(mean_ref.dtype)
    std_ref[...] = std.astype(std_ref.dtype)


def revin_denorm_kernel(x_ref, mean_ref, std_ref, w_ref, b_ref, y_ref):
    """Inverse transform using stored statistics (mode='denorm')."""
    x = x_ref[...].astype(jnp.float32)                  # (bb, T, C)
    mean = mean_ref[...].astype(jnp.float32)            # (bb, 1, C)
    std = std_ref[...].astype(jnp.float32)              # (bb, 1, C)
    w = w_ref[...].astype(jnp.float32)                  # (1, C)
    b = b_ref[...].astype(jnp.float32)                  # (1, C)

    # hoist per-channel constants: ((x - b) / (w + eps^2)) * std + mean
    #   == x * scale + offset
    inv_w = 1.0 / (w + jnp.float32(EPS * EPS))          # tiny (1, C) divide
    scale = std * inv_w                                 # (bb, 1, C)
    offset = mean - b * scale                           # (bb, 1, C)

    y_ref[...] = (x * scale + offset).astype(y_ref.dtype)


# ----------------------------- wrappers ------------------------------------

def revin_norm(x, weight, bias):
    """x: (B, T, C); weight/bias: (C,). Returns (y, mean, stdev)."""
    B, T, C = x.shape
    itemsize = jnp.dtype(x.dtype).itemsize
    bb = _pick_bb(B, T, C, max(itemsize, 4))
    grid = (B // bb,)

    w2 = weight.reshape(1, C).astype(jnp.float32)
    b2 = bias.reshape(1, C).astype(jnp.float32)

    # TODO(synk): for C < 128 a channels-first (B, C, T) layout from the caller
    # would give lane-dense stores (biggest measured lever); we keep the
    # PyTorch-convention (B, T, C) API and rely on block folding instead.
    out_shapes = (
        jax.ShapeDtypeStruct((B, T, C), x.dtype),
        jax.ShapeDtypeStruct((B, 1, C), jnp.float32),
        jax.ShapeDtypeStruct((B, 1, C), jnp.float32),
    )
    nbytes = B * T * C * itemsize
    cost = pl.CostEstimate(
        flops=8 * B * T * C,
        transcendentals=B * C,
        bytes_accessed=2 * nbytes + 2 * B * C * 4,
    )
    return pl.pallas_call(
        revin_norm_kernel,
        out_shape=out_shapes,
        grid=grid,
        in_specs=[
            pl.BlockSpec((bb, T, C), lambda i: (i, 0, 0)),
            pl.BlockSpec((1, C), lambda i: (0, 0)),
            pl.BlockSpec((1, C), lambda i: (0, 0)),
        ],
        out_specs=(
            pl.BlockSpec((bb, T, C), lambda i: (i, 0, 0)),
            pl.BlockSpec((bb, 1, C), lambda i: (i, 0, 0)),
            pl.BlockSpec((bb, 1, C), lambda i: (i, 0, 0)),
        ),
        compiler_params=pltpu.CompilerParams(
            dimension_semantics=("parallel",),
            vmem_limit_bytes=_VMEM_LIMIT_BYTES,
        ),
        cost_estimate=cost,
    )(x, w2, b2)


def revin_denorm(x, mean, stdev, weight, bias):
    """x: (B, T, C); mean/stdev: (B, 1, C); weight/bias: (C,)."""
    B, T, C = x.shape
    itemsize = jnp.dtype(x.dtype).itemsize
    bb = _pick_bb(B, T, C, max(itemsize, 4))
    grid = (B // bb,)

    w2 = weight.reshape(1, C).astype(jnp.float32)
    b2 = bias.reshape(1, C).astype(jnp.float32)

    nbytes = B * T * C * itemsize
    cost = pl.CostEstimate(
        flops=2 * B * T * C + 4 * B * C,
        transcendentals=0,
        bytes_accessed=2 * nbytes + 2 * B * C * 4,
    )
    return pl.pallas_call(
        revin_denorm_kernel,
        out_shape=jax.ShapeDtypeStruct((B, T, C), x.dtype),
        grid=grid,
        in_specs=[
            pl.BlockSpec((bb, T, C), lambda i: (i, 0, 0)),
            pl.BlockSpec((bb, 1, C), lambda i: (i, 0, 0)),
            pl.BlockSpec((bb, 1, C), lambda i: (i, 0, 0)),
            pl.BlockSpec((1, C), lambda i: (0, 0)),
            pl.BlockSpec((1, C), lambda i: (0, 0)),
        ],
        out_specs=pl.BlockSpec((bb, T, C), lambda i: (i, 0, 0)),
        compiler_params=pltpu.CompilerParams(
            dimension_semantics=("parallel",),
            vmem_limit_bytes=_VMEM_LIMIT_BYTES,
        ),
        cost_estimate=cost,
    )(x, mean, stdev, w2, b2)


class RevINPallas:
    """Mirrors the PyTorch RevIN module's stateful forward(x, mode)."""

    def __init__(self, num_features: int, eps: float = 1e-5, affine: bool = True):
        assert eps == EPS, "kernel compiled with EPS=1e-5"
        self.num_features = num_features
        self.affine = affine
        # deterministic init, same as nn.Parameter(ones/zeros)
        self.affine_weight = jnp.ones((num_features,), jnp.float32)
        self.affine_bias = jnp.zeros((num_features,), jnp.float32)
        # TODO(synk): affine=False reuses weight=1/bias=0; denorm then divides by
        # (1 + eps^2) which perturbs the round-trip at ~1e-10 (vs. skipping it).
        self.mean = None
        self.stdev = None

    def __call__(self, x, mode: str):
        if mode == "norm":
            y, self.mean, self.stdev = revin_norm(
                x, self.affine_weight, self.affine_bias)
            return y
        elif mode == "denorm":
            return revin_denorm(
                x, self.mean, self.stdev, self.affine_weight, self.affine_bias)
        else:
            raise NotImplementedError(mode)


# ----------------------------- demo / check --------------------------------

if __name__ == "__main__":
    key = jax.random.PRNGKey(0)
    B, T, C = 2, 8, 4          # batch=2, seq=8, num_features=4
    x = jax.random.normal(key, (B, T, C), dtype=jnp.float32) * 3.0 + 1.5

    revin = RevINPallas(num_features=C)

    y = revin(x, "norm")
    x_rec = revin(y, "denorm")
    jax.block_until_ready((y, x_rec))

    # pure-JAX reference (same semantics as the PyTorch module)
    mean_ref = jnp.mean(x, axis=1, keepdims=True)
    std_ref = jnp.sqrt(jnp.var(x, axis=1, keepdims=True) + EPS)
    y_ref = (x - mean_ref) / std_ref * revin.affine_weight + revin.affine_bias
    den_ref = ((y_ref - revin.affine_bias) / (revin.affine_weight + EPS * EPS)
               ) * std_ref + mean_ref

    assert jnp.allclose(y, y_ref, atol=1e-4, rtol=1e-4)
    assert jnp.allclose(revin.mean, mean_ref, atol=1e-4, rtol=1e-4)
    assert jnp.allclose(revin.stdev, std_ref, atol=1e-4, rtol=1e-4)
    assert jnp.allclose(x_rec, den_ref, atol=1e-4, rtol=1e-4)
    assert jnp.allclose(x_rec, x, atol=1e-3, rtol=1e-3)  # round-trip
    print("KERNEL_OK")
</pallas_src>

<mosaic_0001>
module attributes {stable_mosaic.version = 11 : i64} {
  func.func @revin_norm_kernel(%arg0: i32, %arg1: memref<1x8x4xf32, #tpu.memory_space<vmem>>, %arg2: memref<1x4xf32, #tpu.memory_space<vmem>>, %arg3: memref<1x4xf32, #tpu.memory_space<vmem>>, %arg4: memref<1x8x4xf32, #tpu.memory_space<vmem>>, %arg5: memref<1x1x4xf32, #tpu.memory_space<vmem>>, %arg6: memref<1x1x4xf32, #tpu.memory_space<vmem>>) attributes {dimension_semantics = [#tpu.dimension_semantics<parallel>], iteration_bounds = array<i64: 2>, scalar_prefetch = 0 : i64, scratch_operands = 0 : i64, tpu.core_type = #tpu.core_type<tc>, window_params = [{transform_indices = @transform_0, window_bounds = array<i64: 1, 8, 4>}, {pipeline_mode = #tpu.pipeline_mode<synchronous>, transform_indices = @transform_1, window_bounds = array<i64: 1, 4>}, {pipeline_mode = #tpu.pipeline_mode<synchronous>, transform_indices = @transform_2, window_bounds = array<i64: 1, 4>}, {transform_indices = @transform_3, window_bounds = array<i64: 1, 8, 4>}, {transform_indices = @transform_4, window_bounds = array<i64: 1, 1, 4>}, {transform_indices = @transform_5, window_bounds = array<i64: 1, 1, 4>}]} {
    %c0 = arith.constant 0 : index
    %c0_0 = arith.constant 0 : index
    %c0_1 = arith.constant 0 : index
    %0 = vector.load %arg1[%c0, %c0_0, %c0_1] : memref<1x8x4xf32, #tpu.memory_space<vmem>>, vector<1x8x4xf32>
    %cst = arith.constant dense<0.000000e+00> : vector<1x4xf32>
    %1 = vector.multi_reduction <add>, %0, %cst [1] : vector<1x8x4xf32> to vector<1x4xf32>
    %2 = vector.shape_cast %1 : vector<1x4xf32> to vector<1x1x4xf32>
    %3 = arith.mulf %0, %0 : vector<1x8x4xf32>
    %cst_2 = arith.constant dense<0.000000e+00> : vector<1x4xf32>
    %4 = vector.multi_reduction <add>, %3, %cst_2 [1] : vector<1x8x4xf32> to vector<1x4xf32>
    %5 = vector.shape_cast %4 : vector<1x4xf32> to vector<1x1x4xf32>
    %cst_3 = arith.constant 1.250000e-01 : f32
    %6 = vector.broadcast %cst_3 : f32 to vector<1x1x4xf32>
    %7 = arith.mulf %2, %6 : vector<1x1x4xf32>
    %cst_4 = arith.constant 1.250000e-01 : f32
    %8 = vector.broadcast %cst_4 : f32 to vector<1x1x4xf32>
    %9 = arith.mulf %5, %8 : vector<1x1x4xf32>
    %10 = arith.mulf %7, %7 : vector<1x1x4xf32>
    %11 = arith.subf %9, %10 : vector<1x1x4xf32>
    %cst_5 = arith.constant 0.000000e+00 : f32
    %12 = vector.broadcast %cst_5 : f32 to vector<1x1x4xf32>
    %13 = arith.maximumf %11, %12 : vector<1x1x4xf32>
    %cst_6 = arith.constant 9.99999974E-6 : f32
    %14 = vector.broadcast %cst_6 : f32 to vector<1x1x4xf32>
    %15 = arith.addf %13, %14 : vector<1x1x4xf32>
    %16 = math.rsqrt %15 : vector<1x1x4xf32>
    %cst_7 = arith.constant 9.99999974E-6 : f32
    %17 = vector.broadcast %cst_7 : f32 to vector<1x1x4xf32>
    %18 = arith.addf %13, %17 : vector<1x1x4xf32>
    %19 = arith.mulf %18, %16 : vector<1x1x4xf32>
    %c0_8 = arith.constant 0 : index
    %c0_9 = arith.constant 0 : index
    %20 = vector.load %arg2[%c0_8, %c0_9] : memref<1x4xf32, #tpu.memory_space<vmem>>, vector<1x4xf32>
    %c0_10 = arith.constant 0 : index
    %c0_11 = arith.constant 0 : index
    %21 = vector.load %arg3[%c0_10, %c0_11] : memref<1x4xf32, #tpu.memory_space<vmem>>, vector<1x4xf32>
    %22 = vector.shape_cast %20 : vector<1x4xf32> to vector<1x1x4xf32>
    %23 = arith.mulf %22, %16 : vector<1x1x4xf32>
    %24 = arith.mulf %7, %23 : vector<1x1x4xf32>
    %25 = vector.shape_cast %21 : vector<1x4xf32> to vector<1x1x4xf32>
    %26 = arith.subf %25, %24 : vector<1x1x4xf32>
    %27 = vector.broadcast %23 : vector<1x1x4xf32> to vector<1x8x4xf32>
    %28 = arith.mulf %0, %27 : vector<1x8x4xf32>
    %29 = vector.broadcast %26 : vector<1x1x4xf32> to vector<1x8x4xf32>
    %30 = arith.addf %28, %29 : vector<1x8x4xf32>
    %c0_12 = arith.constant 0 : index
    %c0_13 = arith.constant 0 : index
    %c0_14 = arith.constant 0 : index
    %31 = vector.load %arg4[%c0_12, %c0_13, %c0_14] : memref<1x8x4xf32, #tpu.memory_space<vmem>>, vector<1x8x4xf32>
    tpu.vector_store %arg4[%c0_12, %c0_13, %c0_14], %30 {strides = array<i32>} : memref<1x8x4xf32, #tpu.memory_space<vmem>>, vector<1x8x4xf32>,
    %c0_15 = arith.constant 0 : index
    %c0_16 = arith.constant 0 : index
    %c0_17 = arith.constant 0 : index
    %32 = vector.load %arg5[%c0_15, %c0_16, %c0_17] : memref<1x1x4xf32, #tpu.memory_space<vmem>>, vector<1x1x4xf32>
    tpu.vector_store %arg5[%c0_15, %c0_16, %c0_17], %7 {strides = array<i32>} : memref<1x1x4xf32, #tpu.memory_space<vmem>>, vector<1x1x4xf32>,
    %c0_18 = arith.constant 0 : index
    %c0_19 = arith.constant 0 : index
    %c0_20 = arith.constant 0 : index
    %33 = vector.load %arg6[%c0_18, %c0_19, %c0_20] : memref<1x1x4xf32, #tpu.memory_space<vmem>>, vector<1x1x4xf32>
    tpu.vector_store %arg6[%c0_18, %c0_19, %c0_20], %19 {strides = array<i32>} : memref<1x1x4xf32, #tpu.memory_space<vmem>>, vector<1x1x4xf32>,
    return
  }
  func.func @transform_0(%arg0: i32) -> (i32, i32, i32) {
    %c0_i32 = arith.constant 0 : i32
    %c0_i32_0 = arith.constant 0 : i32
    %c0_i32_1 = arith.constant 0 : i32
    return %arg0, %c0_i32, %c0_i32_0 : i32, i32, i32
  }
  func.func @transform_1(%arg0: i32) -> (i32, i32) {
    %c0_i32 = arith.constant 0 : i32
    %c0_i32_0 = arith.constant 0 : i32
    %c0_i32_1 = arith.constant 0 : i32
    return %c0_i32, %c0_i32_0 : i32, i32
  }
  func.func @transform_2(%arg0: i32) -> (i32, i32) {
    %c0_i32 = arith.constant 0 : i32
    %c0_i32_0 = arith.constant 0 : i32
    %c0_i32_1 = arith.constant 0 : i32
    return %c0_i32, %c0_i32_0 : i32, i32
  }
  func.func @transform_3(%arg0: i32) -> (i32, i32, i32) {
    %c0_i32 = arith.constant 0 : i32
    %c0_i32_0 = arith.constant 0 : i32
    %c0_i32_1 = arith.constant 0 : i32
    return %arg0, %c0_i32, %c0_i32_0 : i32, i32, i32
  }
  func.func @transform_4(%arg0: i32) -> (i32, i32, i32) {
    %c0_i32 = arith.constant 0 : i32
    %c0_i32_0 = arith.constant 0 : i32
    %c0_i32_1 = arith.constant 0 : i32
    return %arg0, %c0_i32, %c0_i32_0 : i32, i32, i32
  }
  func.func @transform_5(%arg0: i32) -> (i32, i32, i32) {
    %c0_i32 = arith.constant 0 : i32
    %c0_i32_0 = arith.constant 0 : i32
    %c0_i32_1 = arith.constant 0 : i32
    return %arg0, %c0_i32, %c0_i32_0 : i32, i32, i32
  }
}

</mosaic_0001>

<bundles_post_ra>
// kernel: tpu_custom_call.1
= control target key start
LH: loop header
LB: loop body
LE: loop exit
PB: predicated region body
PF: predicated region fallthrough
CT: control target
= control target key end

     0   :  { %11 = vsyncpa [#allocation3], 0  ;;  %s780_s0 = inlined_call_operand.vmem [shape: f32[2,8,4], index: 0, kind: input, shape index: {}]   ;;  %s781_s1 = inlined_call_operand.vmem [shape: f32[1,4], index: 1, kind: input, shape index: {}]   ;;  %s782_s2 = inlined_call_operand.vmem [shape: f32[1,4], index: 2, kind: input, shape index: {}]   ;;  %s783_s3 = inlined_call_operand.vmem [shape: f32[2,8,4], index: 3, kind: output, shape index: {0}]   ;;  %s784_s4 = inlined_call_operand.hbm [shape: f32[2,1,4], index: 4, kind: output, shape index: {1}]   ;;  %s785_s5 = inlined_call_operand.hbm [shape: f32[2,1,4], index: 5, kind: output, shape index: {2}]  }
   0x1   :  { %13 = vsyncpa [#allocation3 + $0x1], 0 }
   0x2   :  { %14 = vsyncpa [#allocation5], 0 }
   0x3   :  { %16 = vsyncpa [#allocation5 + $0x1], 0  ;;  %s615_s18 = smov 0   ;;  %s617_s19 = smov 0  }
   0x4   :  { %s619_s20 = smov 0   ;;  %s621_s21 = smov 0  }
   0x5 LB: > { %s636_s22 = sadd.s32 4294967295, %s581_s21   ;;  %s431_s23 = sadd.s32 4294967294, %s581_s21   ;;  %s581_s21 = sphi %s621_s21, %s791_s21   ;;  %s577_s20 = sphi %s619_s20, %s790_s20   ;;  %s573_s19 = sphi %s617_s19, %s789_s19   ;;  %s569_s18 = sphi %s615_s18, %s788_s18  }
   0x6   : > { %s640_s24 = sadd.s32 1, %s581_s21   ;;  %s123_s25 = sadd.s32 1, %s577_s20 }
   0x7   : > { %s120_s26 = ssub.s32 %s581_s21, %s640_s24  ;;  %p133_p0 = scmp.ne.s32.totalorder %s577_s20, %s573_s19 }
   0x8   : > { %p121_p1 = scmp.eq.s32.totalorder %s120_s26, 0  ;;  %p134_p2 = scmp.eq.s32.totalorder %s636_s22, 1 }
   0x9   : > { %p139_p3 = scmp.ne.s32.totalorder %s573_s19, %s569_s18  ;;  %p140_p4 = scmp.eq.s32.totalorder %s431_s23, 1 }
   0xa   : > { %s651_s27 = scalar_select %p121_p1, %s577_s20, %s123_s25  }
   0xb   : > { %p653_p5 = por %p134_p2, %p133_p0  ;;  %p657_p6 = por %p140_p4, %p139_p3 }
   0xc   : > { %p434_p7 = scmp.ge.s32.totalorder %s581_s21, 1  ;;  %p197_p8 = scmp.lt.s32.totalorder %s581_s21, 3 }
   0xe   : > { %p198_p9 = pnand %p434_p7, %p197_p8 }
   0xf   : > { %p231_p10 = scmp.lt.s32.totalorder (!%p198_p9), %s636_s22, 1  ;;  %vm240_vm0 = vcmask (!%p198_p9), 31744   ;;  %s681_s10 = sand.u32 (!%p198_p9), 1, %s573_s19   ;;  %vm284_vm1 = vcmask (!%p198_p9), 24576  }
  0x10   : > { %201 = sbr.rel (%p198_p9) target bundleno = 95 (0x5f), region = 32  ;;  %s224_s11 = scalar_lea.vmem (!%p198_p9), [#allocation2], %s681_s10 }
  0x11   : > { %s311_s12 = sshll.u32 (!%p198_p9), %s224_s11, 4  ;;  %s437_s13 = sshll.u32 (!%p198_p9), %s636_s22, 4  ;;  %s685_s12 = int_to_ptr.vmem [resolvable:$true] %s311_s12 }
  0x12   : > { %s692_s16 = scalar_lea.hbm (!%p198_p9), %s784_s4, %s437_s13  ;;  %s292_s17 = scalar_lea.sflag (!%p198_p9), [#allocation3], %s681_s10 }
  0x13   : > { %s487_s23 = scalar_lea.vmem (!%p198_p9), %s685_s12, 16  ;;  %s583_s25 = smov (!%p198_p9), [#allocation2]  }
  0x14   : > { %p488_p11 = scmp.ne.s32.totalorder (!%p198_p9), %s685_s12, %s487_s23  ;;  %s491_s26 = sshll.u32 (!%p198_p9), %s583_s25, 4  ;;  %s492_s26 = int_to_ptr.vmem [resolvable:$false] %s491_s26 }
  0x15   : > { %s493_s7 = scalar_lea.vmem (!%p198_p9), %s492_s26, 32  ;;  %p494_p0 = scmp.lt.s32.totalorder (!%p198_p9), %s685_s12, %s492_s26 }
  0x16   : > { %p489_p12 = pnand (!%p198_p9), %p488_p11, %p653_p5  ;;  %p495_p1 = scmp.lt.s32.totalorder (!%p198_p9), %s493_s7, %s487_s23 }
  0x17   : > { %s665_s30 = scalar_select %p231_p10, %s636_s22, 1 }
  0x18   : > { %p490_p13 = pneg %p489_p12  ;;  %p496_p2 = por %p495_p1, %p494_p0 }
  0x19   : > { %s435_s6 = sshll.u32 %s665_s30, 3 }
  0x1a   : > { %s234_s9 = scalar_lea.vmem %s780_s0, %s435_s6  ;;  %p497_p3 = pnand %p496_p2, %p490_p13 }
  0x1b   : > { %v673_v0 = vld [vmem:[%s234_s9] sm:$0xff] }
  0x1c   : > { %v241_v1 = vsel %vm240_vm0, %v673_v0, 0.0  ;;  %v248_v2 = vmul.f32 %v673_v0, %v673_v0 }
  0x1d   : > { %v242_v3 = vrot.slane %v241_v1, 4 }
  0x1e   : > { %v249_v4 = vsel %vm240_vm0, %v248_v2, 0.0 }
  0x1f   : > { %v243_v5 = vadd.f32 %v242_v3, %v241_v1  ;;  %v250_v6 = vrot.slane %v249_v4, 4 }
  0x21   : > { %v244_v7 = vrot.slane %v243_v5, 2  ;;  %v251_v8 = vadd.f32 %v250_v6, %v249_v4 }
  0x23   : > { %v245_v9 = vadd.f32 %v244_v7, %v243_v5  ;;  %v252_v10 = vrot.slane %v251_v8, 2 }
  0x25   : > { %v246_v11 = vrot.slane %v245_v9, 1  ;;  %v253_v12 = vadd.f32 %v252_v10, %v251_v8 }
  0x27   : > { %v247_v13 = vadd.f32 %v246_v11, %v245_v9  ;;  %v254_v14 = vrot.slane %v253_v12, 1 }
  0x29   : > { %v256_v15 = vmul.f32 0.125, %v247_v13  ;;  %v255_v16 = vadd.f32 %v254_v14, %v253_v12 }
  0x2b   : > { %v258_v17 = vmul.f32 %v256_v15, %v256_v15  ;;  %285 = vst.msk [vmem:[%s224_s11] sm:$0x1] %vm284_vm1, %v256_v15  ;;  %v257_v18 = vmul.f32 0.125, %v255_v16 }
  0x2c   : > { %500 = shalt.err (!%p497_p3)
}
  0x2d   : > { %s501_s8 = scalar_lea.hbm %s692_s16, 16  ;;  %s505_s14 = scalar_lea.hbm %s784_s4, 32 }
  0x2e   : > { %p502_p4 = scmp.ne.s32.totalorder %s692_s16, %s501_s8  ;;  %p506_p9 = scmp.lt.u32.totalorder %s692_s16, %s784_s4 }
  0x2f   : > { %p507_p10 = scmp.lt.u32.totalorder %s505_s14, %s501_s8  ;;  %p509_p12 = scmp.lt.u32.totalorder %s501_s8, %s692_s16 }
  0x30   : > { %p503_p7 = pnand %p502_p4, %p653_p5 }
  0x31   : > { %p508_p11 = por %p507_p10, %p506_p9 }
  0x32   : > { %p504_p8 = pneg %p503_p7 }
  0x33   : > { %p510_p13 = por %p509_p12, %p508_p11 }
  0x35   : > { %p511_p0 = pnand %p510_p13, %p504_p8 }
  0x37   : > { %514 = shalt.err (!%p511_p0)
}
  0x38   : > { %441 = dma.vmem_to_hbm [thread:$0]  (%p653_p5), %s685_s12, 16, %s692_s16, %s292_s17   ;;  %v259_v19 = vsub.f32 %v257_v18, %v258_v17  ;;  %v270_v22 = vlaneseq  ;;  %v264_v24 = vld [vmem:[%s781_s1] sm:$0x1] }
  0x39   : > { %s230_s23 = scalar_lea.vmem [#allocation4], %s681_s10  ;;  %s728_s17 = scalar_lea.hbm %s785_s5, %s437_s13  ;;  %v265_v29 = vld [vmem:[%s782_s2] sm:$0x1] }
  0x3a   : > { %v260_v20 = vmax.f32 %v259_v19, 0.0  ;;  %v271_v23 = vshrl.u32 %v270_v22, 7  ;;  %s324_s26 = sshll.u32 %s230_s23, 4  ;;  %s296_s14 = scalar_lea.sflag [#allocation5], %s681_s10  ;;  %s721_s26 = int_to_ptr.vmem [resolvable:$true] %s324_s26 }
  0x3b   : > { %s515_s15 = scalar_lea.vmem %s721_s26, 16  ;;  %s584_s22 = smov [#allocation4]  }
  0x3c   : > { %v261_v21 = vadd.f32 1e-05, %v260_v20  ;;  %v272_v25 = vsub.s32 0, %v271_v23  ;;  %p516_p1 = scmp.ne.s32.totalorder %s721_s26, %s515_s15  ;;  %s519_s25 = sshll.u32 %s584_s22, 4  ;;  %s520_s25 = int_to_ptr.vmem [resolvable:$false] %s519_s25 }
  0x3d   : > { %s521_s7 = scalar_lea.vmem %s520_s25, 32  ;;  %p522_p4 = scmp.lt.s32.totalorder %s721_s26, %s520_s25 }
  0x3e   : > { %485 = vrsqrt.f32 %v261_v21  ;;  %p517_p2 = pnand %p516_p1, %p653_p5  ;;  %p523_p7 = scmp.lt.s32.totalorder %s521_s7, %s515_s15 }
  0x40   : > { %p518_p3 = pneg %p517_p2  ;;  %p524_p8 = por %p523_p7, %p522_p4 }
  0x42   : > { %p525_p9 = pnand %p524_p8, %p518_p3 }
  0x48   : > { %v486_v26 = vpop.eup %485 }
  0x49   : > { %v263_v27 = vmul.f32 %v486_v26, %v261_v21  ;;  %v266_v28 = vmul.f32 %v486_v26, %v264_v24 }
  0x4b   : > { %286 = vst.msk [vmem:[%s230_s23] sm:$0x1] %vm284_vm1, %v263_v27  ;;  %v267_v30 = vmul.f32 %v266_v28, %v256_v15  ;;  %v273_v31 = vrot.slane %v266_v28, %v272_v25 }
  0x4c   : > { %528 = shalt.err (!%p525_p9)
}
  0x4d   : > { %s529_s10 = scalar_lea.hbm %s728_s17, 16  ;;  %s533_s8 = scalar_lea.hbm %s785_s5, 32 }
  0x4e   : > { %p530_p10 = scmp.ne.s32.totalorder %s728_s17, %s529_s10  ;;  %p534_p13 = scmp.lt.u32.totalorder %s728_s17, %s785_s5 }
  0x4f   : > { %p535_p0 = scmp.lt.u32.totalorder %s533_s8, %s529_s10  ;;  %p537_p2 = scmp.lt.u32.totalorder %s529_s10, %s728_s17 }
  0x50   : > { %p531_p11 = pnand %p530_p10, %p653_p5 }
  0x51   : > { %p536_p1 = por %p535_p0, %p534_p13 }
  0x52   : > { %p532_p12 = pneg %p531_p11 }
  0x53   : > { %p538_p3 = por %p537_p2, %p536_p1 }
  0x55   : > { %p539_p4 = pnand %p538_p3, %p532_p12 }
  0x57   : > { %542 = shalt.err (!%p539_p4)
}
  0x58   : > { %442 = dma.vmem_to_hbm [thread:$0]  (%p653_p5), %s721_s26, 16, %s728_s17, %s296_s14   ;;  %v268_v32 = vsub.f32 %v265_v29, %v267_v30  ;;  %v275_v33 = vmul.f32 %v273_v31, %v673_v0 }
  0x59   : > { %s238_s15 = scalar_lea.vmem %s783_s3, %s435_s6 }
  0x5a   : > { %v280_v34 = vrot.slane %v268_v32, %v272_v25 }
  0x5c   : > { %v282_v35 = vadd.f32 %v280_v34, %v275_v33 }
  0x5e   : > { %283 = vst.msk [vmem:[%s238_s15] sm:$0xff] %vm240_vm0, %v282_v35 }
  0x5f PF: > { %p452_p7 = scmp.ge.s32.totalorder %s581_s21, 2  ;;  %s343_s28 = sand.u32 1, %s569_s18  }
  0x60   : > { %s344_s26 = scalar_lea.sflag [#allocation3], %s343_s28 }
  0x61   : > { %p446_p5 = pnand %p452_p7, %p657_p6 }
  0x63   : > { %560 = dma.done.wait (!%p446_p5), %s344_s26, 16  }
  0x64   : > { %562 = vsyncadd (!%p446_p5), %s344_s26, 4294967280  ;;  %s352_s17 = scalar_lea.sflag [#allocation5], %s343_s28 }
  0x65   : > { %564 = dma.done.wait (!%p446_p5), %s352_s17, 16  }
  0x66   : > { %566 = vsyncadd (!%p446_p5), %s352_s17, 4294967280  ;;  %p19_p8 = scmp.ge.s32.totalorder %s640_s24, 4   ;;  %s788_s18 = smov %s573_s19 }
  0x67   : > { %s789_s19 = smov %s577_s20  ;;  %s790_s20 = smov %s651_s27 }
  0x68   : > { %s791_s21 = smov %s640_s24  ;;  %21 = sbr.rel (!%p19_p8) target bundleno = 5 (0x5), region = 96 }
  0x6f   :  { %356 = vsyncpa [#allocation3], 1 }
  0x70   :  { %358 = vsyncpa [#allocation3 + $0x1], 1 }
  0x71   :  { %359 = vsyncpa [#allocation5], 1 }
  0x72   :  { %361 = vsyncpa [#allocation5 + $0x1], 1 }

</bundles_post_ra>
